<compile_context>
chip_gen: v6e
topology: v6e:2x2x1
jax: 0.10.0
libtpu: 0.0.40
codegen_flags: <defaults>
</compile_context>

<pallas_src>
import jax
import jax.numpy as jnp
from jax.experimental import pallas as pl
from jax.experimental.pallas import tpu as pltpu


def _spatial_gate_kernel(bias_ref, x_ref, mh_ref, av_ref, o_ref):
    # bias_ref: SMEM (1,)            folded BN bias (scalar)
    # x_ref   : VMEM (1, C, H, W)    current batch sample
    # mh_ref  : VMEM (2, K, W, W)    banded horizontal-conv matrices (BN folded)
    # av_ref  : VMEM (K, H, H)       vertical shift (zero-padded) matrices
    # o_ref   : VMEM (1, C, H, W)
    _, _, H, W = x_ref.shape
    K = mh_ref.shape[1]

    x = x_ref[0].astype(jnp.float32)             # (C, H, W)

    cmax = jnp.max(x, axis=0)                    # (H, W) channel max
    cmean = jnp.mean(x, axis=0)                  # (H, W) channel mean

    acc = jnp.zeros((H, W), dtype=jnp.float32)
    for a in range(K):                           # unrolled over kernel rows
        yh = (jnp.dot(cmax, mh_ref[0, a], preferred_element_type=jnp.float32)
              + jnp.dot(cmean, mh_ref[1, a], preferred_element_type=jnp.float32))
        acc = acc + jnp.dot(av_ref[a], yh, preferred_element_type=jnp.float32)

    z = acc + bias_ref[0]
    scale = 1.0 / (1.0 + jnp.exp(-z))            # sigmoid (EUP)
    o_ref[0] = (x * scale[None, :, :]).astype(o_ref.dtype)


def _fold_bn_into_conv(conv_w, gamma, beta, run_mean, run_var, eps):
    s = gamma / jnp.sqrt(run_var + eps)                      # (1,)
    w_f = conv_w * s.reshape(-1, 1, 1, 1)                    # (1, 2, K, K)
    b_f = beta - run_mean * s                                # (1,)
    return w_f.astype(jnp.float32), b_f.astype(jnp.float32)


def _build_conv_matrices(w_f, H, W):
    """Banded / shift matrices implementing the KxK 'same' conv as matmuls."""
    _, _, K, _ = w_f.shape
    P = (K - 1) // 2
    # Horizontal: (row @ Mh[c, a])[j] = sum_b w_f[0, c, a, b] * row[j + b - P]
    k = jnp.arange(W)
    j = jnp.arange(W)
    band = k[:, None] - j[None, :] + P                       # (W, W) tap index b
    valid = ((band >= 0) & (band < K)).astype(jnp.float32)
    mh = w_f[0][:, :, jnp.clip(band, 0, K - 1)] * valid[None, None]   # (2,K,W,W)
    # Vertical: (Av[a] @ z)[i, :] = z[i + a - P, :]  (zero outside [0, H))
    i = jnp.arange(H)
    kk = jnp.arange(H)
    a = jnp.arange(K)
    av = (kk[None, None, :] == i[None, :, None] + a[:, None, None] - P)
    av = av.astype(jnp.float32)                               # (K, H, H)
    return mh, av


def spatial_gate_pallas(x, conv_w, bn_gamma, bn_beta, bn_mean, bn_var, eps=1e-5):
    """Pallas implementation of SpatialGate.forward (eval-mode BN)."""
    B, C, H, W = x.shape
    K = conv_w.shape[-1]
    w_f, bias_f = _fold_bn_into_conv(conv_w, bn_gamma, bn_beta, bn_mean, bn_var, eps)
    mh, av = _build_conv_matrices(w_f, H, W)

    return pl.pallas_call(
        _spatial_gate_kernel,
        out_shape=jax.ShapeDtypeStruct(x.shape, x.dtype),
        grid_spec=pl.GridSpec(
            grid=(B,),
            in_specs=[
                pl.BlockSpec(memory_space=pltpu.MemorySpace.SMEM),     # bias (1,)
                pl.BlockSpec((1, C, H, W), lambda b: (b, 0, 0, 0)),    # x sample
                pl.BlockSpec((2, K, W, W), lambda b: (0, 0, 0, 0)),    # Mh (resident)
                pl.BlockSpec((K, H, H), lambda b: (0, 0, 0)),          # Av (resident)
            ],
            out_specs=pl.BlockSpec((1, C, H, W), lambda b: (b, 0, 0, 0)),
        ),
        # Parallel batch axis -> both v7x TensorCores take samples.
        # For production-size C*H*W, additionally tile C/H here and raise
        # vmem_limit_bytes via pltpu.CompilerParams; demo blocks are KB-scale.
        compiler_params=pltpu.CompilerParams(dimension_semantics=("parallel",)),
    )(bias_f, x, mh, av)


def spatial_gate_ref(x, conv_w, bn_gamma, bn_beta, bn_mean, bn_var, eps=1e-5):
    """Pure-JAX reference (ChannelPool -> Conv2d -> BN(eval) -> sigmoid -> gate)."""
    cmax = jnp.max(x, axis=1, keepdims=True)
    cmean = jnp.mean(x, axis=1, keepdims=True)
    pooled = jnp.concatenate([cmax, cmean], axis=1)                    # (B,2,H,W)
    conv = jax.lax.conv_general_dilated(
        pooled, conv_w, window_strides=(1, 1), padding=((3, 3), (3, 3)),
        dimension_numbers=("NCHW", "OIHW", "NCHW"))
    def r(v):
        return v.reshape(1, -1, 1, 1)
    bn = (conv - r(bn_mean)) / jnp.sqrt(r(bn_var) + eps) * r(bn_gamma) + r(bn_beta)
    scale = jax.nn.sigmoid(bn)
    return x * scale


if __name__ == "__main__":
    key = jax.random.PRNGKey(0)
    kx, kw = jax.random.split(key)

    B, C, H, W = 2, 4, 16, 16
    x = jax.random.normal(kx, (B, C, H, W), dtype=jnp.float32)

    # Conv2d(2, 1, 7, bias=False) weight + BatchNorm2d(1) eval-mode parameters.
    conv_w = 0.1 * jax.random.normal(kw, (1, 2, 7, 7), dtype=jnp.float32)
    bn_gamma = jnp.array([1.3], jnp.float32)
    bn_beta = jnp.array([0.1], jnp.float32)
    bn_mean = jnp.array([0.05], jnp.float32)
    bn_var = jnp.array([0.8], jnp.float32)

    y = spatial_gate_pallas(x, conv_w, bn_gamma, bn_beta, bn_mean, bn_var)
    y = jax.block_until_ready(y)

    ref = spatial_gate_ref(x, conv_w, bn_gamma, bn_beta, bn_mean, bn_var)
    assert y.shape == x.shape and y.dtype == x.dtype
    # Tolerance covers MXU f32 default-precision differences between the
    # kernel's banded matmuls and XLA's conv, not algorithmic error.
    max_diff = float(jnp.max(jnp.abs(y - ref)))
    assert jnp.allclose(y, ref, atol=1e-2, rtol=1e-2), max_diff

    print("KERNEL_OK")
</pallas_src>

<mosaic_0001>
module attributes {stable_mosaic.version = 11 : i64} {
  func.func @_spatial_gate_kernel(%arg0: i32, %arg1: memref<1xf32, #tpu.memory_space<smem>>, %arg2: memref<1x4x16x16xf32, #tpu.memory_space<vmem>>, %arg3: memref<2x7x16x16xf32, #tpu.memory_space<vmem>>, %arg4: memref<7x16x16xf32, #tpu.memory_space<vmem>>, %arg5: memref<1x4x16x16xf32, #tpu.memory_space<vmem>>) attributes {dimension_semantics = [#tpu.dimension_semantics<parallel>], iteration_bounds = array<i64: 2>, scalar_prefetch = 0 : i64, scratch_operands = 0 : i64, tpu.core_type = #tpu.core_type<tc>, window_params = [{transform_indices = @transform_0, window_bounds = array<i64: 1>}, {transform_indices = @transform_1, window_bounds = array<i64: 1, 4, 16, 16>}, {pipeline_mode = #tpu.pipeline_mode<synchronous>, transform_indices = @transform_2, window_bounds = array<i64: 2, 7, 16, 16>}, {pipeline_mode = #tpu.pipeline_mode<synchronous>, transform_indices = @transform_3, window_bounds = array<i64: 7, 16, 16>}, {transform_indices = @transform_4, window_bounds = array<i64: 1, 4, 16, 16>}]} {
    %c0 = arith.constant 0 : index
    %c0_0 = arith.constant 0 : index
    %c0_1 = arith.constant 0 : index
    %c0_2 = arith.constant 0 : index
    %0 = vector.load %arg2[%c0, %c0_0, %c0_1, %c0_2] : memref<1x4x16x16xf32, #tpu.memory_space<vmem>>, vector<1x4x16x16xf32>
    %1 = vector.shape_cast %0 : vector<1x4x16x16xf32> to vector<4x16x16xf32>
    %cst = arith.constant dense<0xFF800000> : vector<16x16xf32>
    %2 = vector.multi_reduction <maximumf>, %1, %cst [0] : vector<4x16x16xf32> to vector<16x16xf32>
    %cst_3 = arith.constant dense<0.000000e+00> : vector<16x16xf32>
    %3 = vector.multi_reduction <add>, %1, %cst_3 [0] : vector<4x16x16xf32> to vector<16x16xf32>
    %cst_4 = arith.constant 4.000000e+00 : f32
    %4 = vector.broadcast %cst_4 : f32 to vector<16x16xf32>
    %5 = arith.divf %3, %4 : vector<16x16xf32>
    %cst_5 = arith.constant 0.000000e+00 : f32
    %6 = vector.broadcast %cst_5 : f32 to vector<16x16xf32>
    %c0_6 = arith.constant 0 : index
    %c0_7 = arith.constant 0 : index
    %c0_8 = arith.constant 0 : index
    %c0_9 = arith.constant 0 : index
    %7 = vector.load %arg3[%c0_6, %c0_7, %c0_8, %c0_9] : memref<2x7x16x16xf32, #tpu.memory_space<vmem>>, vector<1x1x16x16xf32>
    %8 = vector.shape_cast %7 : vector<1x1x16x16xf32> to vector<16x16xf32>
    %cst_10 = arith.constant dense<0.000000e+00> : vector<16x16xf32>
    %9 = tpu.matmul %2, %8, %cst_10 {dimension_numbers = #tpu.dot_dimension_numbers<[1], [0], [0], [1], [0, 0, 1, 1], [], []>} : vector<16x16xf32>, vector<16x16xf32>, vector<16x16xf32> -> vector<16x16xf32>
    %c1 = arith.constant 1 : index
    %c0_11 = arith.constant 0 : index
    %c0_12 = arith.constant 0 : index
    %c0_13 = arith.constant 0 : index
    %10 = vector.load %arg3[%c1, %c0_11, %c0_12, %c0_13] : memref<2x7x16x16xf32, #tpu.memory_space<vmem>>, vector<1x1x16x16xf32>
    %11 = vector.shape_cast %10 : vector<1x1x16x16xf32> to vector<16x16xf32>
    %cst_14 = arith.constant dense<0.000000e+00> : vector<16x16xf32>
    %12 = tpu.matmul %5, %11, %cst_14 {dimension_numbers = #tpu.dot_dimension_numbers<[1], [0], [0], [1], [0, 0, 1, 1], [], []>} : vector<16x16xf32>, vector<16x16xf32>, vector<16x16xf32> -> vector<16x16xf32>
    %13 = arith.addf %9, %12 : vector<16x16xf32>
    %c0_15 = arith.constant 0 : index
    %c0_16 = arith.constant 0 : index
    %c0_17 = arith.constant 0 : index
    %14 = vector.load %arg4[%c0_15, %c0_16, %c0_17] : memref<7x16x16xf32, #tpu.memory_space<vmem>>, vector<1x16x16xf32>
    %15 = vector.shape_cast %14 : vector<1x16x16xf32> to vector<16x16xf32>
    %cst_18 = arith.constant dense<0.000000e+00> : vector<16x16xf32>
    %16 = tpu.matmul %15, %13, %cst_18 {dimension_numbers = #tpu.dot_dimension_numbers<[1], [0], [0], [1], [0, 0, 1, 1], [], []>} : vector<16x16xf32>, vector<16x16xf32>, vector<16x16xf32> -> vector<16x16xf32>
    %17 = arith.addf %6, %16 : vector<16x16xf32>
    %c0_19 = arith.constant 0 : index
    %c1_20 = arith.constant 1 : index
    %c0_21 = arith.constant 0 : index
    %c0_22 = arith.constant 0 : index
    %18 = vector.load %arg3[%c0_19, %c1_20, %c0_21, %c0_22] : memref<2x7x16x16xf32, #tpu.memory_space<vmem>>, vector<1x1x16x16xf32>
    %19 = vector.shape_cast %18 : vector<1x1x16x16xf32> to vector<16x16xf32>
    %cst_23 = arith.constant dense<0.000000e+00> : vector<16x16xf32>
    %20 = tpu.matmul %2, %19, %cst_23 {dimension_numbers = #tpu.dot_dimension_numbers<[1], [0], [0], [1], [0, 0, 1, 1], [], []>} : vector<16x16xf32>, vector<16x16xf32>, vector<16x16xf32> -> vector<16x16xf32>
    %c1_24 = arith.constant 1 : index
    %c1_25 = arith.constant 1 : index
    %c0_26 = arith.constant 0 : index
    %c0_27 = arith.constant 0 : index
    %21 = vector.load %arg3[%c1_24, %c1_25, %c0_26, %c0_27] : memref<2x7x16x16xf32, #tpu.memory_space<vmem>>, vector<1x1x16x16xf32>
    %22 = vector.shape_cast %21 : vector<1x1x16x16xf32> to vector<16x16xf32>
    %cst_28 = arith.constant dense<0.000000e+00> : vector<16x16xf32>
    %23 = tpu.matmul %5, %22, %cst_28 {dimension_numbers = #tpu.dot_dimension_numbers<[1], [0], [0], [1], [0, 0, 1, 1], [], []>} : vector<16x16xf32>, vector<16x16xf32>, vector<16x16xf32> -> vector<16x16xf32>
    %24 = arith.addf %20, %23 : vector<16x16xf32>
    %c1_29 = arith.constant 1 : index
    %c0_30 = arith.constant 0 : index
    %c0_31 = arith.constant 0 : index
    %25 = vector.load %arg4[%c1_29, %c0_30, %c0_31] : memref<7x16x16xf32, #tpu.memory_space<vmem>>, vector<1x16x16xf32>
    %26 = vector.shape_cast %25 : vector<1x16x16xf32> to vector<16x16xf32>
    %cst_32 = arith.constant dense<0.000000e+00> : vector<16x16xf32>
    %27 = tpu.matmul %26, %24, %cst_32 {dimension_numbers = #tpu.dot_dimension_numbers<[1], [0], [0], [1], [0, 0, 1, 1], [], []>} : vector<16x16xf32>, vector<16x16xf32>, vector<16x16xf32> -> vector<16x16xf32>
    %28 = arith.addf %17, %27 : vector<16x16xf32>
    %c0_33 = arith.constant 0 : index
    %c2 = arith.constant 2 : index
    %c0_34 = arith.constant 0 : index
    %c0_35 = arith.constant 0 : index
    %29 = vector.load %arg3[%c0_33, %c2, %c0_34, %c0_35] : memref<2x7x16x16xf32, #tpu.memory_space<vmem>>, vector<1x1x16x16xf32>
    %30 = vector.shape_cast %29 : vector<1x1x16x16xf32> to vector<16x16xf32>
    %cst_36 = arith.constant dense<0.000000e+00> : vector<16x16xf32>
    %31 = tpu.matmul %2, %30, %cst_36 {dimension_numbers = #tpu.dot_dimension_numbers<[1], [0], [0], [1], [0, 0, 1, 1], [], []>} : vector<16x16xf32>, vector<16x16xf32>, vector<16x16xf32> -> vector<16x16xf32>
    %c1_37 = arith.constant 1 : index
    %c2_38 = arith.constant 2 : index
    %c0_39 = arith.constant 0 : index
    %c0_40 = arith.constant 0 : index
    %32 = vector.load %arg3[%c1_37, %c2_38, %c0_39, %c0_40] : memref<2x7x16x16xf32, #tpu.memory_space<vmem>>, vector<1x1x16x16xf32>
    %33 = vector.shape_cast %32 : vector<1x1x16x16xf32> to vector<16x16xf32>
    %cst_41 = arith.constant dense<0.000000e+00> : vector<16x16xf32>
    %34 = tpu.matmul %5, %33, %cst_41 {dimension_numbers = #tpu.dot_dimension_numbers<[1], [0], [0], [1], [0, 0, 1, 1], [], []>} : vector<16x16xf32>, vector<16x16xf32>, vector<16x16xf32> -> vector<16x16xf32>
    %35 = arith.addf %31, %34 : vector<16x16xf32>
    %c2_42 = arith.constant 2 : index
    %c0_43 = arith.constant 0 : index
    %c0_44 = arith.constant 0 : index
    %36 = vector.load %arg4[%c2_42, %c0_43, %c0_44] : memref<7x16x16xf32, #tpu.memory_space<vmem>>, vector<1x16x16xf32>
    %37 = vector.shape_cast %36 : vector<1x16x16xf32> to vector<16x16xf32>
    %cst_45 = arith.constant dense<0.000000e+00> : vector<16x16xf32>
    %38 = tpu.matmul %37, %35, %cst_45 {dimension_numbers = #tpu.dot_dimension_numbers<[1], [0], [0], [1], [0, 0, 1, 1], [], []>} : vector<16x16xf32>, vector<16x16xf32>, vector<16x16xf32> -> vector<16x16xf32>
    %39 = arith.addf %28, %38 : vector<16x16xf32>
    %c0_46 = arith.constant 0 : index
    %c3 = arith.constant 3 : index
    %c0_47 = arith.constant 0 : index
    %c0_48 = arith.constant 0 : index
    %40 = vector.load %arg3[%c0_46, %c3, %c0_47, %c0_48] : memref<2x7x16x16xf32, #tpu.memory_space<vmem>>, vector<1x1x16x16xf32>
    %41 = vector.shape_cast %40 : vector<1x1x16x16xf32> to vector<16x16xf32>
    %cst_49 = arith.constant dense<0.000000e+00> : vector<16x16xf32>
    %42 = tpu.matmul %2, %41, %cst_49 {dimension_numbers = #tpu.dot_dimension_numbers<[1], [0], [0], [1], [0, 0, 1, 1], [], []>} : vector<16x16xf32>, vector<16x16xf32>, vector<16x16xf32> -> vector<16x16xf32>
    %c1_50 = arith.constant 1 : index
    %c3_51 = arith.constant 3 : index
    %c0_52 = arith.constant 0 : index
    %c0_53 = arith.constant 0 : index
    %43 = vector.load %arg3[%c1_50, %c3_51, %c0_52, %c0_53] : memref<2x7x16x16xf32, #tpu.memory_space<vmem>>, vector<1x1x16x16xf32>
    %44 = vector.shape_cast %43 : vector<1x1x16x16xf32> to vector<16x16xf32>
    %cst_54 = arith.constant dense<0.000000e+00> : vector<16x16xf32>
    %45 = tpu.matmul %5, %44, %cst_54 {dimension_numbers = #tpu.dot_dimension_numbers<[1], [0], [0], [1], [0, 0, 1, 1], [], []>} : vector<16x16xf32>, vector<16x16xf32>, vector<16x16xf32> -> vector<16x16xf32>
    %46 = arith.addf %42, %45 : vector<16x16xf32>
    %c3_55 = arith.constant 3 : index
    %c0_56 = arith.constant 0 : index
    %c0_57 = arith.constant 0 : index
    %47 = vector.load %arg4[%c3_55, %c0_56, %c0_57] : memref<7x16x16xf32, #tpu.memory_space<vmem>>, vector<1x16x16xf32>
    %48 = vector.shape_cast %47 : vector<1x16x16xf32> to vector<16x16xf32>
    %cst_58 = arith.constant dense<0.000000e+00> : vector<16x16xf32>
    %49 = tpu.matmul %48, %46, %cst_58 {dimension_numbers = #tpu.dot_dimension_numbers<[1], [0], [0], [1], [0, 0, 1, 1], [], []>} : vector<16x16xf32>, vector<16x16xf32>, vector<16x16xf32> -> vector<16x16xf32>
    %50 = arith.addf %39, %49 : vector<16x16xf32>
    %c0_59 = arith.constant 0 : index
    %c4 = arith.constant 4 : index
    %c0_60 = arith.constant 0 : index
    %c0_61 = arith.constant 0 : index
    %51 = vector.load %arg3[%c0_59, %c4, %c0_60, %c0_61] : memref<2x7x16x16xf32, #tpu.memory_space<vmem>>, vector<1x1x16x16xf32>
    %52 = vector.shape_cast %51 : vector<1x1x16x16xf32> to vector<16x16xf32>
    %cst_62 = arith.constant dense<0.000000e+00> : vector<16x16xf32>
    %53 = tpu.matmul %2, %52, %cst_62 {dimension_numbers = #tpu.dot_dimension_numbers<[1], [0], [0], [1], [0, 0, 1, 1], [], []>} : vector<16x16xf32>, vector<16x16xf32>, vector<16x16xf32> -> vector<16x16xf32>
    %c1_63 = arith.constant 1 : index
    %c4_64 = arith.constant 4 : index
    %c0_65 = arith.constant 0 : index
    %c0_66 = arith.constant 0 : index
    %54 = vector.load %arg3[%c1_63, %c4_64, %c0_65, %c0_66] : memref<2x7x16x16xf32, #tpu.memory_space<vmem>>, vector<1x1x16x16xf32>
    %55 = vector.shape_cast %54 : vector<1x1x16x16xf32> to vector<16x16xf32>
    %cst_67 = arith.constant dense<0.000000e+00> : vector<16x16xf32>
    %56 = tpu.matmul %5, %55, %cst_67 {dimension_numbers = #tpu.dot_dimension_numbers<[1], [0], [0], [1], [0, 0, 1, 1], [], []>} : vector<16x16xf32>, vector<16x16xf32>, vector<16x16xf32> -> vector<16x16xf32>
    %57 = arith.addf %53, %56 : vector<16x16xf32>
    %c4_68 = arith.constant 4 : index
    %c0_69 = arith.constant 0 : index
    %c0_70 = arith.constant 0 : index
    %58 = vector.load %arg4[%c4_68, %c0_69, %c0_70] : memref<7x16x16xf32, #tpu.memory_space<vmem>>, vector<1x16x16xf32>
    %59 = vector.shape_cast %58 : vector<1x16x16xf32> to vector<16x16xf32>
    %cst_71 = arith.constant dense<0.000000e+00> : vector<16x16xf32>
    %60 = tpu.matmul %59, %57, %cst_71 {dimension_numbers = #tpu.dot_dimension_numbers<[1], [0], [0], [1], [0, 0, 1, 1], [], []>} : vector<16x16xf32>, vector<16x16xf32>, vector<16x16xf32> -> vector<16x16xf32>
    %61 = arith.addf %50, %60 : vector<16x16xf32>
    %c0_72 = arith.constant 0 : index
    %c5 = arith.constant 5 : index
    %c0_73 = arith.constant 0 : index
    %c0_74 = arith.constant 0 : index
    %62 = vector.load %arg3[%c0_72, %c5, %c0_73, %c0_74] : memref<2x7x16x16xf32, #tpu.memory_space<vmem>>, vector<1x1x16x16xf32>
    %63 = vector.shape_cast %62 : vector<1x1x16x16xf32> to vector<16x16xf32>
    %cst_75 = arith.constant dense<0.000000e+00> : vector<16x16xf32>
    %64 = tpu.matmul %2, %63, %cst_75 {dimension_numbers = #tpu.dot_dimension_numbers<[1], [0], [0], [1], [0, 0, 1, 1], [], []>} : vector<16x16xf32>, vector<16x16xf32>, vector<16x16xf32> -> vector<16x16xf32>
    %c1_76 = arith.constant 1 : index
    %c5_77 = arith.constant 5 : index
    %c0_78 = arith.constant 0 : index
    %c0_79 = arith.constant 0 : index
    %65 = vector.load %arg3[%c1_76, %c5_77, %c0_78, %c0_79] : memref<2x7x16x16xf32, #tpu.memory_space<vmem>>, vector<1x1x16x16xf32>
    %66 = vector.shape_cast %65 : vector<1x1x16x16xf32> to vector<16x16xf32>
    %cst_80 = arith.constant dense<0.000000e+00> : vector<16x16xf32>
    %67 = tpu.matmul %5, %66, %cst_80 {dimension_numbers = #tpu.dot_dimension_numbers<[1], [0], [0], [1], [0, 0, 1, 1], [], []>} : vector<16x16xf32>, vector<16x16xf32>, vector<16x16xf32> -> vector<16x16xf32>
    %68 = arith.addf %64, %67 : vector<16x16xf32>
    %c5_81 = arith.constant 5 : index
    %c0_82 = arith.constant 0 : index
    %c0_83 = arith.constant 0 : index
    %69 = vector.load %arg4[%c5_81, %c0_82, %c0_83] : memref<7x16x16xf32, #tpu.memory_space<vmem>>, vector<1x16x16xf32>
    %70 = vector.shape_cast %69 : vector<1x16x16xf32> to vector<16x16xf32>
    %cst_84 = arith.constant dense<0.000000e+00> : vector<16x16xf32>
    %71 = tpu.matmul %70, %68, %cst_84 {dimension_numbers = #tpu.dot_dimension_numbers<[1], [0], [0], [1], [0, 0, 1, 1], [], []>} : vector<16x16xf32>, vector<16x16xf32>, vector<16x16xf32> -> vector<16x16xf32>
    %72 = arith.addf %61, %71 : vector<16x16xf32>
    %c0_85 = arith.constant 0 : index
    %c6 = arith.constant 6 : index
    %c0_86 = arith.constant 0 : index
    %c0_87 = arith.constant 0 : index
    %73 = vector.load %arg3[%c0_85, %c6, %c0_86, %c0_87] : memref<2x7x16x16xf32, #tpu.memory_space<vmem>>, vector<1x1x16x16xf32>
    %74 = vector.shape_cast %73 : vector<1x1x16x16xf32> to vector<16x16xf32>
    %cst_88 = arith.constant dense<0.000000e+00> : vector<16x16xf32>
    %75 = tpu.matmul %2, %74, %cst_88 {dimension_numbers = #tpu.dot_dimension_numbers<[1], [0], [0], [1], [0, 0, 1, 1], [], []>} : vector<16x16xf32>, vector<16x16xf32>, vector<16x16xf32> -> vector<16x16xf32>
    %c1_89 = arith.constant 1 : index
    %c6_90 = arith.constant 6 : index
    %c0_91 = arith.constant 0 : index
    %c0_92 = arith.constant 0 : index
    %76 = vector.load %arg3[%c1_89, %c6_90, %c0_91, %c0_92] : memref<2x7x16x16xf32, #tpu.memory_space<vmem>>, vector<1x1x16x16xf32>
    %77 = vector.shape_cast %76 : vector<1x1x16x16xf32> to vector<16x16xf32>
    %cst_93 = arith.constant dense<0.000000e+00> : vector<16x16xf32>
    %78 = tpu.matmul %5, %77, %cst_93 {dimension_numbers = #tpu.dot_dimension_numbers<[1], [0], [0], [1], [0, 0, 1, 1], [], []>} : vector<16x16xf32>, vector<16x16xf32>, vector<16x16xf32> -> vector<16x16xf32>
    %79 = arith.addf %75, %78 : vector<16x16xf32>
    %c6_94 = arith.constant 6 : index
    %c0_95 = arith.constant 0 : index
    %c0_96 = arith.constant 0 : index
    %80 = vector.load %arg4[%c6_94, %c0_95, %c0_96] : memref<7x16x16xf32, #tpu.memory_space<vmem>>, vector<1x16x16xf32>
    %81 = vector.shape_cast %80 : vector<1x16x16xf32> to vector<16x16xf32>
    %cst_97 = arith.constant dense<0.000000e+00> : vector<16x16xf32>
    %82 = tpu.matmul %81, %79, %cst_97 {dimension_numbers = #tpu.dot_dimension_numbers<[1], [0], [0], [1], [0, 0, 1, 1], [], []>} : vector<16x16xf32>, vector<16x16xf32>, vector<16x16xf32> -> vector<16x16xf32>
    %83 = arith.addf %72, %82 : vector<16x16xf32>
    %c0_98 = arith.constant 0 : index
    %84 = memref.load %arg1[%c0_98] : memref<1xf32, #tpu.memory_space<smem>>
    %85 = vector.broadcast %84 : f32 to vector<16x16xf32>
    %86 = arith.addf %83, %85 : vector<16x16xf32>
    %cst_99 = arith.constant 0.000000e+00 : f32
    %87 = vector.broadcast %cst_99 : f32 to vector<16x16xf32>
    %88 = arith.subf %87, %86 : vector<16x16xf32>
    %89 = math.exp %88 : vector<16x16xf32>
    %cst_100 = arith.constant 1.000000e+00 : f32
    %90 = vector.broadcast %cst_100 : f32 to vector<16x16xf32>
    %91 = arith.addf %90, %89 : vector<16x16xf32>
    %cst_101 = arith.constant 1.000000e+00 : f32
    %92 = vector.broadcast %cst_101 : f32 to vector<16x16xf32>
    %93 = arith.divf %92, %91 : vector<16x16xf32>
    %94 = vector.shape_cast %93 : vector<16x16xf32> to vector<1x16x16xf32>
    %95 = vector.broadcast %94 : vector<1x16x16xf32> to vector<4x16x16xf32>
    %96 = arith.mulf %1, %95 : vector<4x16x16xf32>
    %c0_102 = arith.constant 0 : index
    %c0_103 = arith.constant 0 : index
    %c0_104 = arith.constant 0 : index
    %c0_105 = arith.constant 0 : index
    %97 = vector.load %arg5[%c0_102, %c0_103, %c0_104, %c0_105] : memref<1x4x16x16xf32, #tpu.memory_space<vmem>>, vector<1x4x16x16xf32>
    %98 = vector.shape_cast %97 : vector<1x4x16x16xf32> to vector<4x16x16xf32>
    %99 = vector.shape_cast %96 : vector<4x16x16xf32> to vector<1x4x16x16xf32>
    tpu.vector_store %arg5[%c0_102, %c0_103, %c0_104, %c0_105], %99 {strides = array<i32>} : memref<1x4x16x16xf32, #tpu.memory_space<vmem>>, vector<1x4x16x16xf32>,
    return
  }
  func.func @transform_0(%arg0: i32) -> i32 {
    %c0_i32 = arith.constant 0 : i32
    %c0_i32_0 = arith.constant 0 : i32
    return %c0_i32 : i32
  }
  func.func @transform_1(%arg0: i32) -> (i32, i32, i32, i32) {
    %c0_i32 = arith.constant 0 : i32
    %c0_i32_0 = arith.constant 0 : i32
    %c0_i32_1 = arith.constant 0 : i32
    %c0_i32_2 = arith.constant 0 : i32
    return %arg0, %c0_i32, %c0_i32_0, %c0_i32_1 : i32, i32, i32, i32
  }
  func.func @transform_2(%arg0: i32) -> (i32, i32, i32, i32) {
    %c0_i32 = arith.constant 0 : i32
    %c0_i32_0 = arith.constant 0 : i32
    %c0_i32_1 = arith.constant 0 : i32
    %c0_i32_2 = arith.constant 0 : i32
    %c0_i32_3 = arith.constant 0 : i32
    return %c0_i32, %c0_i32_0, %c0_i32_1, %c0_i32_2 : i32, i32, i32, i32
  }
  func.func @transform_3(%arg0: i32) -> (i32, i32, i32) {
    %c0_i32 = arith.constant 0 : i32
    %c0_i32_0 = arith.constant 0 : i32
    %c0_i32_1 = arith.constant 0 : i32
    %c0_i32_2 = arith.constant 0 : i32
    return %c0_i32, %c0_i32_0, %c0_i32_1 : i32, i32, i32
  }
  func.func @transform_4(%arg0: i32) -> (i32, i32, i32, i32) {
    %c0_i32 = arith.constant 0 : i32
    %c0_i32_0 = arith.constant 0 : i32
    %c0_i32_1 = arith.constant 0 : i32
    %c0_i32_2 = arith.constant 0 : i32
    return %arg0, %c0_i32, %c0_i32_0, %c0_i32_1 : i32, i32, i32, i32
  }
}

</mosaic_0001>

<bundles_post_ra>
// kernel: tpu_custom_call.1
= control target key start
LH: loop header
LB: loop body
LE: loop exit
PB: predicated region body
PF: predicated region fallthrough
CT: control target
= control target key end

     0   :  { %s3025_s0 = inlined_call_operand.<no memory space> [shape: f32[1], index: 0, kind: input, shape index: {}]   ;;  %s3026_s1 = inlined_call_operand.hbm [shape: f32[2,4,16,16], index: 1, kind: input, shape index: {}]   ;;  %s3027_s2 = inlined_call_operand.hbm [shape: f32[2,7,16,16], index: 2, kind: input, shape index: {}]   ;;  %s3028_s3 = inlined_call_operand.hbm [shape: f32[7,16,16], index: 3, kind: input, shape index: {}]   ;;  %s3029_s4 = inlined_call_operand.hbm [shape: f32[2,4,16,16], index: 4, kind: output, shape index: {}]  }
   0x1   :  { %9 = sst [smem:[#allocation2]] %s3025_s0 }
   0x2   :  { %10 = vsyncpa [#allocation4], 0 }
   0x3   :  { %12 = vsyncpa [#allocation4 + $0x1], 0 }
   0x4   :  { %13 = vsyncpa [#allocation7], 0 }
   0x5   :  { %14 = vsyncpa [#allocation5], 0 }
   0x6   :  { %16 = vsyncpa [#allocation5 + $0x1], 0  ;;  %s2682_s17 = smov 0   ;;  %s2684_s18 = smov 0  }
   0x7   :  { %s2686_s19 = smov 0   ;;  %s2688_s20 = smov 0  }
   0x8 LB: > { %s2703_s0 = sadd.s32 4294967295, %s2644_s20   ;;  %s2124_s21 = sadd.s32 4294967294, %s2644_s20   ;;  %s2644_s20 = sphi %s2688_s20, %s3050_s20   ;;  %s2640_s19 = sphi %s2686_s19, %s3049_s19   ;;  %s2636_s18 = sphi %s2684_s18, %s3048_s18   ;;  %s2632_s17 = sphi %s2682_s17, %s3047_s17  }
   0x9   : > { %p63_p0 = scmp.ne.s32.totalorder %s2636_s18, %s2632_s17  ;;  %p3030_p1 = scmp.eq.s32.totalorder %s2703_s0, 0 }
   0xa   : > { %p129_p2 = scmp.eq.s32.totalorder %s2703_s0, 1  ;;  %p135_p3 = scmp.eq.s32.totalorder %s2124_s21, 1 }
   0xb   : > { %p2712_p4 = por %p3030_p1, %p63_p0  ;;  %p2125_p5 = scmp.ge.s32.totalorder %s2644_s20, 1 }
   0xc   : > { %p2717_p6 = por %p135_p3, %p63_p0  ;;  %p142_p7 = scmp.lt.s32.totalorder %s2644_s20, 3 }
   0xd   : > { %s3034_s22 = scalar_select %p2712_p4, 1, 0 }
   0xe   : > { %s3035_s23 = scalar_select %p2717_p6, 1, 0 }
   0xf   : > { %p2722_p8 = pnand %p2125_p5, %p142_p7  ;;  %s2646_s25 = smov [#allocation6]  }
  0x10   : > { %s157_s26 = sshll.u32 %s2646_s25, 4  ;;  %s2647_s28 = smov [#allocation8]   ;;  %s158_s26 = int_to_ptr.vmem [resolvable:$true] %s157_s26 }
  0x11   : > { %s3036_s24 = scalar_select %p2722_p8, 1, 0 }
  0x12   : > { %p2429_p9 = pneg %p2722_p8  ;;  %s170_s29 = sshll.u32 %s2647_s28, 4  ;;  %s171_s29 = int_to_ptr.vmem [resolvable:$true] %s170_s29 }
  0x13   : > { %s2507_s30 = scalar_lea.vmem %s158_s26, 3584  ;;  %p2515_p5 = scmp.lt.s32.totalorder %s158_s26, %s158_s26 }
  0x14   : > { %p2731_p11 = pnand %p2429_p9, %p3030_p1  ;;  %p2508_p13 = scmp.ne.s32.totalorder %s158_s26, %s2507_s30 }
  0x15   : > { %p2516_p7 = scmp.lt.s32.totalorder %s2507_s30, %s2507_s30 }
  0x16   : > { %p2498_p12 = pneg %p2731_p11 }
  0x17   : > { %p2517_p10 = por %p2516_p7, %p2515_p5 }
  0x18   : > { %p2510_p0 = pnand %p2508_p13, %p2498_p12 }
  0x1a   : > { %p2511_p3 = pneg %p2510_p0 }
  0x1c   : > { %p2518_p9 = pnand %p2517_p10, %p2511_p3 }
  0x1e   : > { %2521 = shalt.err (!%p2518_p9)
}
  0x1f   : > { %s2648_s5 = smov 128   ;;  %s2649_s6 = smov 8  }
  0x20   : > { %2432 = dma.hbm_to_vmem [thread:$0]  (!%p2731_p11), %s3027_s2, 3584, %s158_s26, [#allocation7], %s2648_s5, %s2648_s5, %s2649_s6  }
  0x21   : > { %s2533_s9 = scalar_lea.vmem %s171_s29, 1792  ;;  %p2541_p10 = scmp.lt.s32.totalorder %s171_s29, %s171_s29 }
  0x22   : > { %p2534_p13 = scmp.ne.s32.totalorder %s171_s29, %s2533_s9  ;;  %p2542_p3 = scmp.lt.s32.totalorder %s2533_s9, %s2533_s9 }
  0x24   : > { %p2536_p0 = pnand %p2534_p13, %p2498_p12  ;;  %p2543_p7 = por %p2542_p3, %p2541_p10 }
  0x26   : > { %p2537_p5 = pneg %p2536_p0 }
  0x28   : > { %p2544_p9 = pnand %p2543_p7, %p2537_p5 }
  0x2a   : > { %2547 = shalt.err (!%p2544_p9)
}
  0x2b   : > { %2435 = dma.hbm_to_vmem [thread:$0]  (!%p2731_p11), %s3028_s3, 1792, %s171_s29, [#allocation7], %s2648_s5, %s2648_s5, %s2649_s6  }
  0x2c   : > { %s2760_s12 = sadd.s32 1, %s2644_s20   ;;  %s50_s13 = sadd.s32 1, %s2640_s19 }
  0x2d   : > { %s47_s14 = ssub.s32 %s2644_s20, %s2760_s12  ;;  %p57_p12 = scmp.ne.s32.totalorder %s2640_s19, %s2636_s18 }
  0x2e   : > { %p48_p13 = scmp.eq.s32.totalorder %s47_s14, 0  ;;  %p58_p0 = scmp.eq.s32.totalorder %s2644_s20, 0 }
  0x2f   : > { %p2770_p5 = por %p129_p2, %p57_p12  ;;  %p2446_p10 = scmp.lt.s32.totalorder %s2644_s20, 2 }
  0x30   : > { %s2776_s16 = scalar_select %p48_p13, %s2640_s19, %s50_s13  }
  0x31   : > { %s3038_s15 = scalar_select %p2770_p5, 1, 0 }
  0x32   : > { %p59_p3 = por %p58_p0, %p57_p12  ;;  %s184_s21 = sand.u32 1, %s2640_s19  }
  0x33   : > { %s2129_s25 = sshll.u32 %s184_s21, 6  ;;  %s2184_s26 = sshll.u32 %s2644_s20, 10 }
  0x34   : > { %s2783_s29 = scalar_lea.hbm %s3026_s1, %s2184_s26  ;;  %s188_s30 = scalar_lea.vmem [#allocation3], %s2129_s25 }
  0x35   : > { %s195_s7 = sshll.u32 %s188_s30, 4  ;;  %p2787_p2 = pnand %p2446_p10, %p59_p3  ;;  %s2785_s7 = int_to_ptr.vmem [resolvable:$true] %s195_s7 }
  0x36   : > { %s2791_s9 = scalar_lea.sflag [#allocation4], %s184_s21  ;;  %s2548_s10 = scalar_lea.hbm %s2783_s29, 1024 }
  0x37   : > { %p2549_p11 = scmp.ne.s32.totalorder %s2783_s29, %s2548_s10  ;;  %p2550_p7 = pneg %p2787_p2 }
  0x38   : > { %s2553_s14 = scalar_lea.hbm %s3026_s1, 2048  ;;  %p2554_p13 = scmp.lt.s32.totalorder %s2783_s29, %s3026_s1 }
  0x39   : > { %p2551_p9 = pnand %p2550_p7, %p2549_p11  ;;  %p2555_p0 = scmp.lt.s32.totalorder %s2553_s14, %s2548_s10 }
  0x3b   : > { %p2552_p12 = pneg %p2551_p9  ;;  %p2556_p10 = por %p2555_p0, %p2554_p13 }
  0x3d   : > { %p2557_p3 = pnand %p2556_p10, %p2552_p12 }
  0x3f   : > { %2560 = shalt.err (!%p2557_p3)
}
  0x40   : > { %s2561_s21 = scalar_lea.vmem %s2785_s7, 1024  ;;  %s2650_s27 = smov [#allocation3]  }
  0x41   : > { %p2562_p1 = scmp.ne.s32.totalorder %s2785_s7, %s2561_s21  ;;  %s2566_s28 = sshll.u32 %s2650_s27, 4  ;;  %s2567_s28 = int_to_ptr.vmem [resolvable:$false] %s2566_s28 }
  0x42   : > { %s2568_s30 = scalar_lea.vmem %s2567_s28, 2048  ;;  %p2569_p9 = scmp.lt.s32.totalorder %s2785_s7, %s2567_s28 }
  0x43   : > { %p2564_p6 = pnand %p2562_p1, %p2550_p7  ;;  %p2570_p5 = scmp.lt.s32.totalorder %s2568_s30, %s2561_s21 }
  0x45   : > { %p2565_p11 = pneg %p2564_p6  ;;  %p2571_p4 = por %p2570_p5, %p2569_p9 }
  0x47   : > { %p2572_p8 = pnand %p2571_p4, %p2565_p11 }
  0x49   : > { %2575 = shalt.err (!%p2572_p8)
}
  0x4a   : > { %2439 = dma.hbm_to_vmem [thread:$0]  (!%p2787_p2), %s2783_s29, 1024, %s2785_s7, %s2791_s9, %s2648_s5, %s2648_s5, %s2649_s6  }
  0x4b   : > { %p3040_p1 = scmp.ne.s32.totalorder %s3036_s24, 0 }
  0x4c   : > { %s2818_s10 = sand.u32 (!%p3040_p1), 1, %s2636_s18   ;;  %p3041_p4 = scmp.ne.s32.totalorder (!%p3040_p1), %s3034_s22, 0 }
  0x4d   : > { %207 = sbr.rel (%p3040_p1) target bundleno = 1572 (0x624), region = 36  ;;  %s2133_s11 = sshll.u32 (!%p3040_p1), %s2818_s10, 6 }
  0x4e   : > { %s210_s13 = scalar_lea.sflag (!%p3040_p1), [#allocation4], %s2818_s10  ;;  %s213_s8 = scalar_lea.vmem (!%p3040_p1), [#allocation3], %s2133_s11 }
  0x52   : > { %2619 = dma.done.wait (%p3041_p4), %s210_s13, 1024  }
  0x53   : > { %2621 = vsyncadd (%p3041_p4), %s210_s13, 4294966272  ;;  %p3042_p6 = scmp.eq.s32.totalorder %s2703_s0, 0 }
  0x55   : > { %2623 = dma.done.wait (%p3042_p6), [#allocation7], 5376   ;;  %p3043_p8 = pmov %p3042_p6 }
  0x56   : > { %v287_v0 = vld [vmem:[#allocation6 + $0x8] sm:$0xff]  ;;  %v290_v1 = vld [vmem:[#allocation6 + $0x78] sm:$0xff]  ;;  %v286_v2 = vld [vmem:[#allocation6] sm:$0xff]  ;;  %vm254_vm0 = vcmask 130048   ;;  %s1986_s22 = sld [smem:[#allocation2]]  ;;  %s2185_s24 = sshll.u32 %s2703_s0, 10 }
  0x57   : > { %2625 = vsyncadd (%p3043_p8), [#allocation7], 4294961920  ;;  %2277 = vmatprep.subr.mxu1 %v287_v0  ;;  %2270 = vmatprep.subr.mxu0 %v290_v1  ;;  %v2832_v3 = vld [vmem:[%s213_s8] sm:$0xff]  ;;  %v2834_v4 = vld [vmem:[%s213_s8 + $0x10] sm:$0xff]  ;;  %s245_s5 = scalar_lea.vmem [#allocation9], %s2133_s11  ;;  %s2968_s9 = scalar_lea.hbm %s3029_s4, %s2185_s24 }
  0x58   : > { %v2836_v5 = vld [vmem:[%s213_s8 + $0x20] sm:$0xff]  ;;  %2278 = vmatpush3.msra.mxu1 %v287_v0  ;;  %2271 = vmatpush3.msra.mxu0 %v290_v1  ;;  %v2838_v6 = vld [vmem:[%s213_s8 + $0x30] sm:$0xff]  ;;  %v255_v7 = vsel %vm254_vm0, %v2832_v3, -inf  ;;  %v256_v8 = vsel %vm254_vm0, %v2834_v4, -inf  ;;  %v2846_v11 = vld [vmem:[%s213_s8 + $0x8] sm:$0xff]  ;;  %v269_v18 = vsel %vm254_vm0, %v2832_v3, 0.0 }
  0x59   : > { %v257_v9 = vsel %vm254_vm0, %v2836_v5, -inf  ;;  %v289_v10 = vld [vmem:[#allocation6 + $0x70] sm:$0xff]  ;;  %2279 = vmatprep.subr.mxu1 %v286_v2  ;;  %v259_v13 = vsel %vm254_vm0, %v2838_v6, -inf  ;;  %v2850_v14 = vld [vmem:[%s213_s8 + $0x18] sm:$0xff]  ;;  %v2852_v15 = vld [vmem:[%s213_s8 + $0x28] sm:$0xff]  ;;  %v262_v17 = vsel %vm254_vm0, %v2846_v11, -inf }
  0x5a   : > { %v258_v12 = vmax.f32 %v255_v7, %v257_v9  ;;  %2272 = vmatprep.subr.mxu0 %v289_v10  ;;  %v2854_v16 = vld [vmem:[%s213_s8 + $0x38] sm:$0xff]  ;;  %2280 = vmatpush3.msra.mxu1 %v286_v2  ;;  %v260_v19 = vmax.f32 %v256_v8, %v259_v13  ;;  %v263_v20 = vsel %vm254_vm0, %v2850_v14, -inf  ;;  %v264_v21 = vsel %vm254_vm0, %v2852_v15, -inf  ;;  %v460_v24 = vld [vmem:[#allocation6 + $0x88] sm:$0xff]  ;;  %v456_v38 = vld [vmem:[#allocation6 + $0x10] sm:$0xff]  ;;  %s2032_s6 = sshll.u32 %s245_s5, 4  ;;  %s2970_s6 = int_to_ptr.vmem [resolvable:$true] %s2032_s6 }
  0x5b   : > { %v266_v22 = vsel %vm254_vm0, %v2854_v16, -inf  ;;  %v457_v23 = vld [vmem:[#allocation6 + $0x18] sm:$0xff]  ;;  %2273 = vmatpush3.msra.mxu0 %v289_v10  ;;  %v265_v25 = vmax.f32 %v262_v17, %v264_v21  ;;  %v270_v27 = vsel %vm254_vm0, %v2834_v4, 0.0  ;;  %v272_v28 = vsel %vm254_vm0, %v2836_v5, 0.0  ;;  %v459_v45 = vld [vmem:[#allocation6 + $0x80] sm:$0xff]  ;;  %v612_v47 = vld [vmem:[#allocation8 + $0x10] sm:$0xff] }
  0x5c   : > { %v267_v26 = vmax.f32 %v263_v20, %v266_v22  ;;  %2291 = vmatprep.subr.mxu1 %v457_v23  ;;  %2284 = vmatprep.subr.mxu0 %v460_v24  ;;  %v2870_v29 = vmax.f32 %v258_v12, %v260_v19  ;;  %v271_v30 = vadd.f32 %v270_v27, %v269_v18  ;;  %v276_v31 = vsel %vm254_vm0, %v2846_v11, 0.0  ;;  %v453_v46 = vld [vmem:[#allocation8] sm:$0xff]  ;;  %v454_v56 = vld [vmem:[#allocation8 + $0x8] sm:$0xff]  ;;  %v613_v63 = vld [vmem:[#allocation8 + $0x18] sm:$0xff]  ;;  %s2019_s0 = scalar_lea.sflag [#allocation5], %s2818_s10  ;;  %s2576_s14 = scalar_lea.vmem %s2970_s6, 1024 }
  0x5d   : > { %v274_v33 = vsel %vm254_vm0, %v2838_v6, 0.0  ;;  %v277_v34 = vsel %vm254_vm0, %v2850_v14, 0.0  ;;  %v279_v35 = vsel %vm254_vm0, %v2852_v15, 0.0  ;;  %v281_v39 = vsel %vm254_vm0, %v2854_v16, 0.0  ;;  %v778_v58 = vld [vmem:[#allocation6 + $0x28] sm:$0xff]  ;;  %v777_v62 = vld [vmem:[#allocation6 + $0x20] sm:$0xff]  ;;  %p2577_p5 = scmp.ne.s32.totalorder %s2970_s6, %s2576_s14 }
  0x5e   : > { %v2874_v32 = vmax.f32 %v265_v25, %v267_v26  ;;  %2281 = vmatprep.mubr.msk.f32.mxu1 %vm254_vm0, %v2870_v29  ;;  %v273_v36 = vadd.f32 %v272_v28, %v271_v30  ;;  %v278_v37 = vadd.f32 %v277_v34, %v276_v31  ;;  %v781_v0 = vld [vmem:[#allocation6 + $0x98] sm:$0xff]  ;;  %v780_v1 = vld [vmem:[#allocation6 + $0x90] sm:$0xff]  ;;  %v1023_v2 = vld [vmem:[#allocation6 + $0xa8] sm:$0xff]  ;;  %p3044_p2 = scmp.ne.s32.totalorder %s3038_s15, 0  ;;  %s2651_s25 = smov [#allocation9]  }
  0x5f   : > { %v933_v7 = vld [vmem:[#allocation8 + $0x20] sm:$0xff]  ;;  %v934_v25 = vld [vmem:[#allocation8 + $0x28] sm:$0xff]  ;;  %v1020_v26 = vld [vmem:[#allocation6 + $0x38] sm:$0xff]  ;;  %s2580_s26 = sshll.u32 %s2651_s25, 4  ;;  %s2581_s26 = int_to_ptr.vmem [resolvable:$false] %s2580_s26 }
  0x60   : > { %2282 = vmatmul.mubr.msk.f32.vlgmr.msra.gmra.mxu1 %vm254_vm0, %v2874_v32  ;;  %v275_v40 = vadd.f32 %v274_v33, %v273_v36  ;;  %v280_v41 = vadd.f32 %v279_v35, %v278_v37  ;;  %v1022_v8 = vld [vmem:[#allocation6 + $0xa0] sm:$0xff]  ;;  %v1019_v27 = vld [vmem:[#allocation6 + $0x30] sm:$0xff]  ;;  %v1265_v28 = vld [vmem:[#allocation6 + $0xb8] sm:$0xff]  ;;  %p2578_p7 = pnand %p2577_p5, %p3044_p2  ;;  %s2582_s21 = scalar_lea.vmem %s2581_s26, 2048 }
  0x61   : > { %2292 = vmatpush3.msra.mxu1 %v457_v23  ;;  %2295 = vmatprep.mubr.msk.f32.mxu1 %vm254_vm0, %v2870_v29  ;;  %v1175_v30 = vld [vmem:[#allocation8 + $0x30] sm:$0xff]  ;;  %p2583_p13 = scmp.lt.s32.totalorder %s2970_s6, %s2581_s26  ;;  %p2584_p0 = scmp.lt.s32.totalorder %s2582_s21, %s2576_s14 }
  0x62   : > { %2293 = vmatprep.subr.mxu1 %v456_v38  ;;  %v2890_v42 = vmul.f32 0.25, %v275_v40  ;;  %v282_v43 = vadd.f32 %v281_v39, %v280_v41  ;;  %v1264_v31 = vld [vmem:[#allocation6 + $0xb0] sm:$0xff]  ;;  %p2579_p12 = pneg %p2578_p7 }
  0x63   : > { %2294 = vmatpush3.msra.mxu1 %v456_v38  ;;  %p2585_p10 = por %p2584_p0, %p2583_p13 }
  0x64   : > { %2296 = vmatmul.mubr.msk.f32.vlgmr.msra.gmra.mxu1 %vm254_vm0, %v2874_v32  ;;  %2274 = vmatprep.mubr.msk.f32.mxu0 %vm254_vm0, %v2890_v42  ;;  %v2896_v44 = vmul.f32 0.25, %v282_v43 }
  0x65   : > { %2309 = vmatprep.mubr.msk.f32.mxu1 %vm254_vm0, %v453_v46  ;;  %v1262_v46 = vld [vmem:[#allocation6 + $0x48] sm:$0xff]  ;;  %p2586_p3 = pnand %p2585_p10, %p2579_p12 }
  0x66   : > { %2275 = vmatmul.mubr.msk.f32.vlgmr.msra.gmra.mxu0 %vm254_vm0, %v2896_v44 }
  0x67   : > { %2285 = vmatpush3.msra.mxu0 %v460_v24  ;;  %2288 = vmatprep.mubr.msk.f32.mxu0 %vm254_vm0, %v2890_v42 }
  0x68   : > { %2286 = vmatprep.subr.mxu0 %v459_v45 }
  0x69   : > { %2287 = vmatpush3.msra.mxu0 %v459_v45  ;;  %v1176_v45 = vld [vmem:[#allocation8 + $0x38] sm:$0xff] }
  0x6a   : > { %2289 = vmatmul.mubr.msk.f32.vlgmr.msra.gmra.mxu0 %vm254_vm0, %v2896_v44 }
  0x6b   : > { %2302 = vmatprep.mubr.msk.f32.mxu0 %vm254_vm0, %v612_v47  ;;  %v1261_v47 = vld [vmem:[#allocation6 + $0x40] sm:$0xff] }
 0x120   : > { %v2283_v48 = vpop.f32.mrf.mxu1 }
 0x122   : > { %v444_v49 = vpop.f32.mrf.mxu1 }
 0x124   : > { %v2297_v53 = vpop.f32.mrf.mxu1 }
 0x126   : > { %v2276_v50 = vpop.f32.mrf.mxu0  ;;  %v602_v59 = vpop.f32.mrf.mxu1 }
 0x127   : > { %v450_v51 = vadd.f32 %v2283_v48, %v2276_v50  ;;  %v1507_v48 = vld [vmem:[#allocation6 + $0xc8] sm:$0xff]  ;;  %v1506_v50 = vld [vmem:[#allocation6 + $0xc0] sm:$0xff] }
 0x128   : > { %v363_v52 = vpop.f32.mrf.mxu0 }
 0x129   : > { %v445_v54 = vadd.f32 %v444_v49, %v363_v52  ;;  %2305 = vmatprep.subr.mxu1 %v450_v51  ;;  %v1417_v49 = vld [vmem:[#allocation8 + $0x40] sm:$0xff] }
 0x12a   : > { %v2290_v55 = vpop.f32.mrf.mxu0  ;;  %2306 = vmatpush3.msra.mxu1 %v450_v51 }
 0x12b   : > { %v608_v57 = vadd.f32 %v2297_v53, %v2290_v55  ;;  %2307 = vmatprep.subr.mxu1 %v445_v54 }
 0x12c   : > { %v527_v60 = vpop.f32.mrf.mxu0  ;;  %2308 = vmatpush3.msra.mxu1 %v445_v54 }
 0x12d   : > { %v603_v61 = vadd.f32 %v602_v59, %v527_v60  ;;  %2298 = vmatprep.subr.mxu0 %v608_v57  ;;  %2310 = vmatmul.mubr.msk.f32.vlgmr.msra.gmra.mxu1 %vm254_vm0, %v454_v56 }
 0x12e   : > { %2299 = vmatpush3.msra.mxu0 %v608_v57  ;;  %2319 = vmatprep.subr.mxu1 %v778_v58 }
 0x12f   : > { %2300 = vmatprep.subr.mxu0 %v603_v61  ;;  %2320 = vmatpush3.msra.mxu1 %v778_v58 }
 0x130   : > { %2301 = vmatpush3.msra.mxu0 %v603_v61  ;;  %2321 = vmatprep.subr.mxu1 %v777_v62  ;;  %v1418_v61 = vld [vmem:[#allocation8 + $0x48] sm:$0xff] }
 0x131   : > { %2303 = vmatmul.mubr.msk.f32.vlgmr.msra.gmra.mxu0 %vm254_vm0, %v613_v63  ;;  %2312 = vmatprep.subr.mxu0 %v781_v0  ;;  %v1503_v63 = vld [vmem:[#allocation6 + $0x50] sm:$0xff] }
 0x132   : > { %2313 = vmatpush3.msra.mxu0 %v781_v0  ;;  %2322 = vmatpush3.msra.mxu1 %v777_v62  ;;  %v1504_v62 = vld [vmem:[#allocation6 + $0x58] sm:$0xff] }
 0x133   : > { %2323 = vmatprep.mubr.msk.f32.mxu1 %vm254_vm0, %v2870_v29  ;;  %2314 = vmatprep.subr.mxu0 %v780_v1  ;;  %v1749_v0 = vld [vmem:[#allocation6 + $0xd8] sm:$0xff] }
 0x134   : > { %2324 = vmatmul.mubr.msk.f32.vlgmr.msra.gmra.mxu1 %vm254_vm0, %v2874_v32  ;;  %2315 = vmatpush3.msra.mxu0 %v780_v1  ;;  %v1659_v1 = vld [vmem:[#allocation8 + $0x50] sm:$0xff] }
 0x135   : > { %2316 = vmatprep.mubr.msk.f32.mxu0 %vm254_vm0, %v2890_v42  ;;  %2337 = vmatprep.mubr.msk.f32.mxu1 %vm254_vm0, %v2890_v42 }
 0x136   : > { %2317 = vmatmul.mubr.msk.f32.vlgmr.msra.gmra.mxu0 %vm254_vm0, %v2896_v44  ;;  %2333 = vmatprep.subr.mxu1 %v1023_v2 }
 0x137   : > { %2330 = vmatprep.mubr.msk.f32.mxu0 %vm254_vm0, %v933_v7  ;;  %2334 = vmatpush3.msra.mxu1 %v1023_v2  ;;  %v1748_v2 = vld [vmem:[#allocation6 + $0xd0] sm:$0xff] }
 0x138   : > { %2335 = vmatprep.subr.mxu1 %v1022_v8 }
 0x139   : > { %2336 = vmatpush3.msra.mxu1 %v1022_v8 }
 0x13a   : > { %2338 = vmatmul.mubr.msk.f32.vlgmr.msra.gmra.mxu1 %vm254_vm0, %v2896_v44 }
 0x13b   : > { %2351 = vmatprep.mubr.msk.f32.mxu1 %vm254_vm0, %v1175_v30 }
 0x1ed   : > { %v2311_v9 = vpop.f32.mrf.mxu1 }
 0x1ef   : > { %v767_v10 = vpop.f32.mrf.mxu1 }
 0x1f1   : > { %v2304_v12 = vpop.f32.mrf.mxu0 }
 0x1f2   : > { %v773_v13 = vadd.f32 %v2311_v9, %v2304_v12 }
 0x1f3   : > { %v686_v17 = vpop.f32.mrf.mxu0 }
 0x1f4   : > { %v768_v18 = vadd.f32 %v767_v10, %v686_v17  ;;  %v2325_v19 = vpop.f32.mrf.mxu1 }
 0x1f6   : > { %v2318_v20 = vpop.f32.mrf.mxu0  ;;  %v923_v22 = vpop.f32.mrf.mxu1 }
 0x1f7   : > { %v929_v21 = vadd.f32 %v2325_v19, %v2318_v20  ;;  %v1660_v20 = vld [vmem:[#allocation8 + $0x58] sm:$0xff] }
 0x1f8   : > { %v848_v23 = vpop.f32.mrf.mxu0 }
 0x1f9   : > { %v924_v24 = vadd.f32 %v923_v22, %v848_v23  ;;  %2326 = vmatprep.subr.mxu0 %v929_v21  ;;  %v1745_v22 = vld [vmem:[#allocation6 + $0x60] sm:$0xff] }
 0x1fa   : > { %2327 = vmatpush3.msra.mxu0 %v929_v21  ;;  %v2339_v36 = vpop.f32.mrf.mxu1  ;;  %v1746_v21 = vld [vmem:[#allocation6 + $0x68] sm:$0xff] }
 0x1fb   : > { %2328 = vmatprep.subr.mxu0 %v924_v24 }
 0x1fc   : > { %2329 = vmatpush3.msra.mxu0 %v924_v24  ;;  %v1090_v40 = vpop.f32.mrf.mxu1 }
 0x1fd   : > { %2331 = vmatmul.mubr.msk.f32.vlgmr.msra.gmra.mxu0 %vm254_vm0, %v934_v25  ;;  %2340 = vmatprep.subr.mxu0 %v1020_v26 }
 0x1fe   : > { %2341 = vmatpush3.msra.mxu0 %v1020_v26  ;;  %2344 = vmatprep.mubr.msk.f32.mxu0 %vm254_vm0, %v2870_v29 }
 0x1ff   : > { %2342 = vmatprep.subr.mxu0 %v1019_v27 }
 0x200   : > { %2343 = vmatpush3.msra.mxu0 %v1019_v27 }
 0x201   : > { %2345 = vmatmul.mubr.msk.f32.vlgmr.msra.gmra.mxu0 %vm254_vm0, %v2874_v32  ;;  %2354 = vmatprep.subr.mxu0 %v1265_v28 }
 0x202   : > { %2358 = vmatprep.mubr.msk.f32.mxu0 %vm254_vm0, %v2890_v42  ;;  %2355 = vmatpush3.msra.mxu0 %v1265_v28 }
 0x203   : > { %2356 = vmatprep.subr.mxu0 %v1264_v31 }
 0x204   : > { %2357 = vmatpush3.msra.mxu0 %v1264_v31 }
 0x205   : > { %2359 = vmatmul.mubr.msk.f32.vlgmr.msra.gmra.mxu0 %vm254_vm0, %v2896_v44 }
 0x206   : > { %2372 = vmatprep.mubr.msk.f32.mxu0 %vm254_vm0, %v1417_v49 }
 0x2bd   : > { %v2332_v33 = vpop.f32.mrf.mxu0 }
 0x2be   : > { %v1017_v34 = vadd.f32 %v2332_v33, %v773_v13 }
 0x2bf   : > { %v1007_v35 = vpop.f32.mrf.mxu0 }
 0x2c0   : > { %v1016_v37 = vadd.f32 %v1007_v35, %v768_v18  ;;  %v1987_v35 = vstv %s1986_s22 }
 0x2c1   : > { %v2346_v38 = vpop.f32.mrf.mxu0 }
 0x2c2   : > { %v1171_v39 = vadd.f32 %v2346_v38, %v2339_v36 }
 0x2c3   : > { %v1165_v41 = vpop.f32.mrf.mxu0 }
 0x2c4   : > { %v1166_v43 = vadd.f32 %v1165_v41, %v1090_v40  ;;  %2347 = vmatprep.subr.mxu1 %v1171_v39 }
 0x2c5   : > { %2348 = vmatpush3.msra.mxu1 %v1171_v39  ;;  %v2360_v54 = vpop.f32.mrf.mxu0 }
 0x2c6   : > { %2349 = vmatprep.subr.mxu1 %v1166_v43 }
 0x2c7   : > { %2350 = vmatpush3.msra.mxu1 %v1166_v43  ;;  %v1332_v58 = vpop.f32.mrf.mxu0 }
 0x2c8   : > { %2352 = vmatmul.mubr.msk.f32.vlgmr.msra.gmra.mxu1 %vm254_vm0, %v1176_v45  ;;  %2361 = vmatprep.subr.mxu1 %v1262_v46 }
 0x2c9   : > { %2362 = vmatpush3.msra.mxu1 %v1262_v46  ;;  %2365 = vmatprep.mubr.msk.f32.mxu1 %vm254_vm0, %v2870_v29 }
 0x2ca   : > { %2363 = vmatprep.subr.mxu1 %v1261_v47 }
 0x2cb   : > { %2364 = vmatpush3.msra.mxu1 %v1261_v47 }
 0x2cc   : > { %2366 = vmatmul.mubr.msk.f32.vlgmr.msra.gmra.mxu1 %vm254_vm0, %v2874_v32  ;;  %2375 = vmatprep.subr.mxu1 %v1507_v48 }
 0x2cd   : > { %2379 = vmatprep.mubr.msk.f32.mxu1 %vm254_vm0, %v2890_v42  ;;  %2376 = vmatpush3.msra.mxu1 %v1507_v48 }
 0x2ce   : > { %2377 = vmatprep.subr.mxu1 %v1506_v50 }
 0x2cf   : > { %2378 = vmatpush3.msra.mxu1 %v1506_v50 }
 0x2d0   : > { %2380 = vmatmul.mubr.msk.f32.vlgmr.msra.gmra.mxu1 %vm254_vm0, %v2896_v44 }
 0x2d1   : > { %2393 = vmatprep.mubr.msk.f32.mxu1 %vm254_vm0, %v1659_v1 }
 0x388   : > { %v2353_v51 = vpop.f32.mrf.mxu1 }
 0x389   : > { %v1259_v52 = vadd.f32 %v2353_v51, %v1017_v34 }
 0x38a   : > { %v1249_v53 = vpop.f32.mrf.mxu1 }
 0x38b   : > { %v1258_v55 = vadd.f32 %v1249_v53, %v1016_v37 }
 0x38c   : > { %v2367_v56 = vpop.f32.mrf.mxu1 }
 0x38d   : > { %v1413_v57 = vadd.f32 %v2367_v56, %v2360_v54 }
 0x38e   : > { %v1407_v59 = vpop.f32.mrf.mxu1 }
 0x38f   : > { %v1408_v60 = vadd.f32 %v1407_v59, %v1332_v58  ;;  %2368 = vmatprep.subr.mxu0 %v1413_v57 }
 0x390   : > { %2369 = vmatpush3.msra.mxu0 %v1413_v57  ;;  %v2381_v10 = vpop.f32.mrf.mxu1 }
 0x391   : > { %2370 = vmatprep.subr.mxu0 %v1408_v60 }
 0x392   : > { %2371 = vmatpush3.msra.mxu0 %v1408_v60 }
 0x393   : > { %2373 = vmatmul.mubr.msk.f32.vlgmr.msra.gmra.mxu0 %vm254_vm0, %v1418_v61  ;;  %2382 = vmatprep.subr.mxu0 %v1504_v62 }
 0x394   : > { %2383 = vmatpush3.msra.mxu0 %v1504_v62  ;;  %2386 = vmatprep.mubr.msk.f32.mxu0 %vm254_vm0, %v2870_v29 }
 0x395   : > { %2384 = vmatprep.subr.mxu0 %v1503_v63 }
 0x396   : > { %2385 = vmatpush3.msra.mxu0 %v1503_v63 }
 0x397   : > { %2387 = vmatmul.mubr.msk.f32.vlgmr.msra.gmra.mxu0 %vm254_vm0, %v2874_v32  ;;  %2396 = vmatprep.subr.mxu0 %v1749_v0 }
 0x398   : > { %2400 = vmatprep.mubr.msk.f32.mxu0 %vm254_vm0, %v2890_v42  ;;  %2397 = vmatpush3.msra.mxu0 %v1749_v0  ;;  %v1574_v42 = vpop.f32.mrf.mxu1 }
 0x399   : > { %2398 = vmatprep.subr.mxu0 %v1748_v2 }
 0x39a   : > { %2399 = vmatpush3.msra.mxu0 %v1748_v2 }
 0x39b   : > { %2401 = vmatmul.mubr.msk.f32.vlgmr.msra.gmra.mxu0 %vm254_vm0, %v2896_v44  ;;  %v1901_v44 = vld [vmem:[#allocation8 + $0x60] sm:$0xff] }
 0x39c   : > { %2414 = vmatprep.mubr.msk.f32.mxu0 %vm254_vm0, %v1901_v44 }
 0x453   : > { %v2374_v7 = vpop.f32.mrf.mxu0 }
 0x454   : > { %v1501_v8 = vadd.f32 %v2374_v7, %v1259_v52 }
 0x455   : > { %v1491_v9 = vpop.f32.mrf.mxu0 }
 0x456   : > { %v1500_v12 = vadd.f32 %v1491_v9, %v1258_v55 }
 0x457   : > { %v2388_v13 = vpop.f32.mrf.mxu0 }
 0x458   : > { %v1655_v17 = vadd.f32 %v2388_v13, %v2381_v10 }
 0x459   : > { %v1649_v18 = vpop.f32.mrf.mxu0 }
 0x45a   : > { %v1650_v19 = vadd.f32 %v1649_v18, %v1574_v42  ;;  %2389 = vmatprep.subr.mxu1 %v1655_v17 }
 0x45b   : > { %2390 = vmatpush3.msra.mxu1 %v1655_v17  ;;  %v2402_v26 = vpop.f32.mrf.mxu0 }
 0x45c   : > { %2391 = vmatprep.subr.mxu1 %v1650_v19 }
 0x45d   : > { %2392 = vmatpush3.msra.mxu1 %v1650_v19  ;;  %v1816_v31 = vpop.f32.mrf.mxu0 }
 0x45e   : > { %2394 = vmatmul.mubr.msk.f32.vlgmr.msra.gmra.mxu1 %vm254_vm0, %v1660_v20  ;;  %2403 = vmatprep.subr.mxu1 %v1746_v21 }
 0x45f   : > { %2404 = vmatpush3.msra.mxu1 %v1746_v21  ;;  %2407 = vmatprep.mubr.msk.f32.mxu1 %vm254_vm0, %v2870_v29  ;;  %v1902_v29 = vld [vmem:[#allocation8 + $0x68] sm:$0xff] }
 0x460   : > { %2405 = vmatprep.subr.mxu1 %v1745_v22 }
 0x461   : > { %2406 = vmatpush3.msra.mxu1 %v1745_v22 }
 0x462   : > { %2408 = vmatmul.mubr.msk.f32.vlgmr.msra.gmra.mxu1 %vm254_vm0, %v2874_v32 }
 0x51e   : > { %v2395_v23 = vpop.f32.mrf.mxu1 }
 0x51f   : > { %v1743_v24 = vadd.f32 %v2395_v23, %v1501_v8 }
 0x520   : > { %v1733_v25 = vpop.f32.mrf.mxu1 }
 0x521   : > { %v1742_v27 = vadd.f32 %v1733_v25, %v1500_v12 }
 0x522   : > { %v2409_v28 = vpop.f32.mrf.mxu1 }
 0x523   : > { %v1897_v30 = vadd.f32 %v2409_v28, %v2402_v26 }
 0x524   : > { %v1891_v33 = vpop.f32.mrf.mxu1 }
 0x525   : > { %v1892_v34 = vadd.f32 %v1891_v33, %v1816_v31  ;;  %2410 = vmatprep.subr.mxu0 %v1897_v30 }
 0x526   : > { %2411 = vmatpush3.msra.mxu0 %v1897_v30 }
 0x527   : > { %2412 = vmatprep.subr.mxu0 %v1892_v34 }
 0x528   : > { %2413 = vmatpush3.msra.mxu0 %v1892_v34 }
 0x529   : > { %2415 = vmatmul.mubr.msk.f32.vlgmr.msra.gmra.mxu0 %vm254_vm0, %v1902_v29 }
 0x5e9   : > { %v2416_v32 = vpop.f32.mrf.mxu0 }
 0x5ea   : > { %v1985_v36 = vadd.f32 %v2416_v32, %v1743_v24 }
 0x5eb   : > { %v1975_v37 = vpop.f32.mrf.mxu0 }
 0x5ec   : > { %v1989_v38 = vadd.f32 %v1987_v35, %v1985_v36  ;;  %v1984_v39 = vadd.f32 %v1975_v37, %v1742_v27 }
 0x5ee   : > { %v1991_v40 = vsub.f32 0.0, %v1989_v38  ;;  %v1988_v41 = vadd.f32 %v1987_v35, %v1984_v39 }
 0x5f0   : > { %v1994_v43 = vmul.f32 1.442695, %v1991_v40  ;;  %v1990_v45 = vsub.f32 0.0, %v1988_v41 }
 0x5f2   : > { %2488 = vpow2.f32 %v1994_v43  ;;  %v1992_v46 = vmul.f32 1.442695, %v1990_v45 }
 0x5f4   : > { %2490 = vpow2.f32 %v1992_v46 }
 0x5ff   : > { %v2489_v47 = vpop.eup %2488 }
 0x600   : > { %v1997_v48 = vadd.f32 1.0, %v2489_v47 }
 0x601   : > { %v2491_v49 = vpop.eup %2490 }
 0x602   : > { %2492 = vrcp.f32 %v1997_v48  ;;  %v1996_v50 = vadd.f32 1.0, %v2491_v49 }
 0x604   : > { %2494 = vrcp.f32 %v1996_v50 }
 0x60f   : > { %v2493_v51 = vpop.eup %2492 }
 0x610   : > { %v2003_v52 = vmul.f32 %v2493_v51, %v2846_v11  ;;  %v2005_v53 = vmul.f32 %v2493_v51, %v2850_v14  ;;  %v2007_v54 = vmul.f32 %v2493_v51, %v2852_v15  ;;  %v2009_v55 = vmul.f32 %v2493_v51, %v2854_v16 }
 0x611   : > { %v2495_v56 = vpop.eup %2494 }
 0x612   : > { %v2002_v11 = vmul.f32 %v2495_v56, %v2832_v3  ;;  %v2004_v14 = vmul.f32 %v2495_v56, %v2834_v4  ;;  %v2006_v15 = vmul.f32 %v2495_v56, %v2836_v5  ;;  %v2008_v16 = vmul.f32 %v2495_v56, %v2838_v6  ;;  %2011 = vst.msk [vmem:[%s245_s5 + $0x8] sm:$0xff] %vm254_vm0, %v2003_v52 }
 0x613   : > { %2013 = vst.msk [vmem:[%s245_s5 + $0x18] sm:$0xff] %vm254_vm0, %v2005_v53  ;;  %2015 = vst.msk [vmem:[%s245_s5 + $0x28] sm:$0xff] %vm254_vm0, %v2007_v54 }
 0x614   : > { %2017 = vst.msk [vmem:[%s245_s5 + $0x38] sm:$0xff] %vm254_vm0, %v2009_v55  ;;  %2010 = vst.msk [vmem:[%s245_s5] sm:$0xff] %vm254_vm0, %v2002_v11 }
 0x615   : > { %2012 = vst.msk [vmem:[%s245_s5 + $0x10] sm:$0xff] %vm254_vm0, %v2004_v14  ;;  %2014 = vst.msk [vmem:[%s245_s5 + $0x20] sm:$0xff] %vm254_vm0, %v2006_v15 }
 0x616   : > { %2016 = vst.msk [vmem:[%s245_s5 + $0x30] sm:$0xff] %vm254_vm0, %v2008_v16 }
 0x617   : > { %2589 = shalt.err (!%p2586_p3)
}
 0x618   : > { %s2590_s27 = scalar_lea.hbm %s2968_s9, 1024  ;;  %s2594_s11 = scalar_lea.hbm %s3029_s4, 2048 }
 0x619   : > { %p2591_p11 = scmp.ne.s32.totalorder %s2968_s9, %s2590_s27  ;;  %p2595_p4 = scmp.lt.s32.totalorder %s2968_s9, %s3029_s4 }
 0x61a   : > { %p2596_p6 = scmp.lt.s32.totalorder %s2594_s11, %s2590_s27 }
 0x61b   : > { %p2592_p9 = pnand %p2591_p11, %p3044_p2 }
 0x61c   : > { %p2597_p8 = por %p2596_p6, %p2595_p4 }
 0x61d   : > { %p2593_p1 = pneg %p2592_p9 }
 0x61f   : > { %p2598_p5 = pnand %p2597_p8, %p2593_p1 }
 0x621   : > { %2601 = shalt.err (!%p2598_p5)
}
 0x622   : > { %s2652_s22 = smov 128   ;;  %s2653_s24 = smov 8  }
 0x623   : > { %2427 = dma.vmem_to_hbm [thread:$0]  (%p3044_p2), %s2970_s6, 1024, %s2968_s9, %s2019_s0, %s2652_s22, %s2652_s22, %s2653_s24  }
 0x624 PF: > { %s2047_s5 = sand.u32 1, %s2632_s17   ;;  %p3045_p7 = scmp.ne.s32.totalorder %s3035_s23, 0 }
 0x625   : > { %p3046_p12 = scmp.ge.s32.totalorder %s2644_s20, 2  ;;  %s2048_s29 = scalar_lea.sflag [#allocation5], %s2047_s5 }
 0x627   : > { %p2441_p13 = pnand %p3046_p12, %p3045_p7 }
 0x629   : > { %p2442_p0 = pneg %p2441_p13 }
 0x62b   : > { %2627 = dma.done.wait (%p2442_p0), %s2048_s29, 1024  }
 0x62c   : > { %2629 = vsyncadd (%p2442_p0), %s2048_s29, 4294966272  ;;  %p19_p10 = scmp.ge.s32.totalorder %s2760_s12, 4   ;;  %s3047_s17 = smov %s2636_s18 }
 0x62d   : > { %s3048_s18 = smov %s2640_s19  ;;  %s3049_s19 = smov %s2776_s16 }
 0x62e   : > { %s3050_s20 = smov %s2760_s12  ;;  %21 = sbr.rel (!%p19_p10) target bundleno = 8 (0x8), region = 108 }
 0x633   :  { %2053 = vsyncpa [#allocation4], 1 }
 0x634   :  { %2055 = vsyncpa [#allocation4 + $0x1], 1 }
 0x635   :  { %2056 = vsyncpa [#allocation7], 1 }
 0x636   :  { %2057 = vsyncpa [#allocation5], 1 }
 0x637   :  { %2059 = vsyncpa [#allocation5 + $0x1], 1 }

</bundles_post_ra>
